<compile_context>
chip_gen: v7x
topology: tpu7x:2x2x1
jax: 0.10.0
libtpu: 0.0.40
codegen_flags: <defaults>
</compile_context>

<pallas_src>
import math

import jax
import jax.numpy as jnp
from jax.experimental import pallas as pl
from jax.experimental.pallas import tpu as pltpu


def _kernel_flat(x_ref, w_ref, b_ref, o_ref):
    """Lane-dense path: x_ref (TB, F); w_ref/b_ref (F, D); o_ref (TB, F*D)."""
    F, D = w_ref.shape
    # Static (unrolled) per-feature loop: each step lane-broadcasts one x
    # column against one (1, D) parameter row and stores into a dense slice
    # of the flat output row. F is a small trace-time constant for this module.
    for f in range(F):
        xf = x_ref[:, f:f + 1]  # (TB, 1)
        o_ref[:, f * D:(f + 1) * D] = (
            xf * w_ref[f:f + 1, :] + b_ref[f:f + 1, :])


def _kernel_3d(x_ref, w_ref, b_ref, o_ref):
    """Already lane-dense (D % 128 == 0): o_ref is (TB, F, D)."""
    x = x_ref[...]  # (TB, F)
    o_ref[...] = x[:, :, None] * w_ref[...][None] + b_ref[...][None]


def _pick_block_b(B, F, D, target_bytes=4 << 20):
    """Batch rows per output tile: ~4 MiB of f32 output, multiple of 8 sublanes."""
    rows = max(1, target_bytes // (F * D * 4))
    if rows >= B or B <= 8:
        return B
    return max(8, (min(rows, B) // 8) * 8)


def linear_embeddings(x, weight, bias, *, block_b=None):
    """x: (B, F) f32; weight, bias: (F, D) f32 -> (B, F, D) f32."""
    B, F = x.shape
    Fw, D = weight.shape
    assert F == Fw and bias.shape == (F, D)

    TB = _pick_block_b(B, F, D) if block_b is None else block_b
    grid = (pl.cdiv(B, TB),)

    cost = pl.CostEstimate(
        flops=2 * B * F * D,
        transcendentals=0,
        bytes_accessed=4 * (B * F + 2 * F * D + B * F * D),
    )
    cparams = pltpu.CompilerParams(
        dimension_semantics=("parallel",),
        vmem_limit_bytes=32 * 1024 * 1024,
    )

    x_spec = pl.BlockSpec((TB, F), lambda i: (i, 0))
    w_spec = pl.BlockSpec((F, D), lambda i: (0, 0))   # resident across steps
    b_spec = pl.BlockSpec((F, D), lambda i: (0, 0))

    if D % 128 == 0:
        # Embedding dim already fills whole vregs on the lane axis: 3-D layout.
        return pl.pallas_call(
            _kernel_3d,
            out_shape=jax.ShapeDtypeStruct((B, F, D), x.dtype),
            grid=grid,
            in_specs=[x_spec, w_spec, b_spec],
            out_specs=pl.BlockSpec((TB, F, D), lambda i: (i, 0, 0)),
            compiler_params=cparams,
            cost_estimate=cost,
        )(x, weight, bias)

    # Lane-dense path: flat (B, F*D) output, reshaped in the wrapper (free).
    out2 = pl.pallas_call(
        _kernel_flat,
        out_shape=jax.ShapeDtypeStruct((B, F * D), x.dtype),
        grid=grid,
        in_specs=[x_spec, w_spec, b_spec],
        out_specs=pl.BlockSpec((TB, F * D), lambda i: (i, 0)),
        compiler_params=cparams,
        cost_estimate=cost,
    )(x, weight, bias)
    return out2.reshape(B, F, D)


def init_params(key, n_features, d_embedding, dtype=jnp.float32):
    """Deterministic equivalent of _initialize_embeddings: U(-1/sqrt(d), 1/sqrt(d))."""
    kw, kb = jax.random.split(key)
    bound = 1.0 / math.sqrt(d_embedding)
    weight = jax.random.uniform(
        kw, (n_features, d_embedding), dtype, minval=-bound, maxval=bound)
    bias = jax.random.uniform(
        kb, (n_features, d_embedding), dtype, minval=-bound, maxval=bound)
    return weight, bias


def _reference(x, weight, bias):
    return weight[None] * x[..., None] + bias[None]


if __name__ == "__main__":
    key = jax.random.PRNGKey(0)

    # Case 1: module's documented small shape (D < 128 -> lane-dense flat path).
    B, F, D = 4, 8, 32
    kx, kp, key = jax.random.split(key, 3)
    x = jax.random.normal(kx, (B, F), jnp.float32)
    w, b = init_params(kp, F, D)
    out = jax.block_until_ready(linear_embeddings(x, w, b))
    assert out.shape == (B, F, D)
    assert jnp.allclose(out, _reference(x, w, b), atol=1e-6, rtol=1e-6)

    # Case 2: multi-step batch grid (exercises pipelining / the parallel axis).
    B2 = 64
    kx2, kp2, key = jax.random.split(key, 3)
    x2 = jax.random.normal(kx2, (B2, F), jnp.float32)
    w2, b2 = init_params(kp2, F, D)
    out2 = jax.block_until_ready(linear_embeddings(x2, w2, b2, block_b=8))
    assert out2.shape == (B2, F, D)
    assert jnp.allclose(out2, _reference(x2, w2, b2), atol=1e-6, rtol=1e-6)

    # Case 3: lane-aligned embedding width (D % 128 == 0 -> 3-D path).
    B3, D3 = 16, 128
    kx3, kp3, key = jax.random.split(key, 3)
    x3 = jax.random.normal(kx3, (B3, F), jnp.float32)
    w3, b3 = init_params(kp3, F, D3)
    out3 = jax.block_until_ready(linear_embeddings(x3, w3, b3))
    assert out3.shape == (B3, F, D3)
    assert jnp.allclose(out3, _reference(x3, w3, b3), atol=1e-6, rtol=1e-6)

    print("KERNEL_OK")
</pallas_src>

<mosaic_0001>
module attributes {stable_mosaic.version = 11 : i64} {
  func.func @_kernel_flat(%arg0: i32, %arg1: memref<4x8xf32, #tpu.memory_space<vmem>>, %arg2: memref<8x32xf32, #tpu.memory_space<vmem>>, %arg3: memref<8x32xf32, #tpu.memory_space<vmem>>, %arg4: memref<4x256xf32, #tpu.memory_space<vmem>>) attributes {dimension_semantics = [#tpu.dimension_semantics<parallel>], iteration_bounds = array<i64: 1>, scalar_prefetch = 0 : i64, scratch_operands = 0 : i64, tpu.core_type = #tpu.core_type<tc>, window_params = [{transform_indices = @transform_0, window_bounds = array<i64: 4, 8>}, {pipeline_mode = #tpu.pipeline_mode<synchronous>, transform_indices = @transform_1, window_bounds = array<i64: 8, 32>}, {pipeline_mode = #tpu.pipeline_mode<synchronous>, transform_indices = @transform_2, window_bounds = array<i64: 8, 32>}, {transform_indices = @transform_3, window_bounds = array<i64: 4, 256>}]} {
    %c0 = arith.constant 0 : index
    %c0_0 = arith.constant 0 : index
    %0 = vector.load %arg1[%c0, %c0_0] : memref<4x8xf32, #tpu.memory_space<vmem>>, vector<4x1xf32>
    %c0_1 = arith.constant 0 : index
    %c0_2 = arith.constant 0 : index
    %1 = vector.load %arg2[%c0_1, %c0_2] : memref<8x32xf32, #tpu.memory_space<vmem>>, vector<1x32xf32>
    %2 = vector.broadcast %0 : vector<4x1xf32> to vector<4x32xf32>
    %3 = vector.broadcast %1 : vector<1x32xf32> to vector<4x32xf32>
    %4 = arith.mulf %2, %3 : vector<4x32xf32>
    %c0_3 = arith.constant 0 : index
    %c0_4 = arith.constant 0 : index
    %5 = vector.load %arg3[%c0_3, %c0_4] : memref<8x32xf32, #tpu.memory_space<vmem>>, vector<1x32xf32>
    %6 = vector.broadcast %5 : vector<1x32xf32> to vector<4x32xf32>
    %7 = arith.addf %4, %6 : vector<4x32xf32>
    %c0_5 = arith.constant 0 : index
    %c0_6 = arith.constant 0 : index
    %8 = vector.load %arg4[%c0_5, %c0_6] : memref<4x256xf32, #tpu.memory_space<vmem>>, vector<4x32xf32>
    tpu.vector_store %arg4[%c0_5, %c0_6], %7 {strides = array<i32>} : memref<4x256xf32, #tpu.memory_space<vmem>>, vector<4x32xf32>,
    %c0_7 = arith.constant 0 : index
    %c1 = arith.constant 1 : index
    %9 = vector.load %arg1[%c0_7, %c1] : memref<4x8xf32, #tpu.memory_space<vmem>>, vector<4x1xf32>
    %c1_8 = arith.constant 1 : index
    %c0_9 = arith.constant 0 : index
    %10 = vector.load %arg2[%c1_8, %c0_9] : memref<8x32xf32, #tpu.memory_space<vmem>>, vector<1x32xf32>
    %11 = vector.broadcast %9 : vector<4x1xf32> to vector<4x32xf32>
    %12 = vector.broadcast %10 : vector<1x32xf32> to vector<4x32xf32>
    %13 = arith.mulf %11, %12 : vector<4x32xf32>
    %c1_10 = arith.constant 1 : index
    %c0_11 = arith.constant 0 : index
    %14 = vector.load %arg3[%c1_10, %c0_11] : memref<8x32xf32, #tpu.memory_space<vmem>>, vector<1x32xf32>
    %15 = vector.broadcast %14 : vector<1x32xf32> to vector<4x32xf32>
    %16 = arith.addf %13, %15 : vector<4x32xf32>
    %c0_12 = arith.constant 0 : index
    %c32 = arith.constant 32 : index
    %17 = vector.load %arg4[%c0_12, %c32] : memref<4x256xf32, #tpu.memory_space<vmem>>, vector<4x32xf32>
    tpu.vector_store %arg4[%c0_12, %c32], %16 {strides = array<i32>} : memref<4x256xf32, #tpu.memory_space<vmem>>, vector<4x32xf32>,
    %c0_13 = arith.constant 0 : index
    %c2 = arith.constant 2 : index
    %18 = vector.load %arg1[%c0_13, %c2] : memref<4x8xf32, #tpu.memory_space<vmem>>, vector<4x1xf32>
    %c2_14 = arith.constant 2 : index
    %c0_15 = arith.constant 0 : index
    %19 = vector.load %arg2[%c2_14, %c0_15] : memref<8x32xf32, #tpu.memory_space<vmem>>, vector<1x32xf32>
    %20 = vector.broadcast %18 : vector<4x1xf32> to vector<4x32xf32>
    %21 = vector.broadcast %19 : vector<1x32xf32> to vector<4x32xf32>
    %22 = arith.mulf %20, %21 : vector<4x32xf32>
    %c2_16 = arith.constant 2 : index
    %c0_17 = arith.constant 0 : index
    %23 = vector.load %arg3[%c2_16, %c0_17] : memref<8x32xf32, #tpu.memory_space<vmem>>, vector<1x32xf32>
    %24 = vector.broadcast %23 : vector<1x32xf32> to vector<4x32xf32>
    %25 = arith.addf %22, %24 : vector<4x32xf32>
    %c0_18 = arith.constant 0 : index
    %c64 = arith.constant 64 : index
    %26 = vector.load %arg4[%c0_18, %c64] : memref<4x256xf32, #tpu.memory_space<vmem>>, vector<4x32xf32>
    tpu.vector_store %arg4[%c0_18, %c64], %25 {strides = array<i32>} : memref<4x256xf32, #tpu.memory_space<vmem>>, vector<4x32xf32>,
    %c0_19 = arith.constant 0 : index
    %c3 = arith.constant 3 : index
    %27 = vector.load %arg1[%c0_19, %c3] : memref<4x8xf32, #tpu.memory_space<vmem>>, vector<4x1xf32>
    %c3_20 = arith.constant 3 : index
    %c0_21 = arith.constant 0 : index
    %28 = vector.load %arg2[%c3_20, %c0_21] : memref<8x32xf32, #tpu.memory_space<vmem>>, vector<1x32xf32>
    %29 = vector.broadcast %27 : vector<4x1xf32> to vector<4x32xf32>
    %30 = vector.broadcast %28 : vector<1x32xf32> to vector<4x32xf32>
    %31 = arith.mulf %29, %30 : vector<4x32xf32>
    %c3_22 = arith.constant 3 : index
    %c0_23 = arith.constant 0 : index
    %32 = vector.load %arg3[%c3_22, %c0_23] : memref<8x32xf32, #tpu.memory_space<vmem>>, vector<1x32xf32>
    %33 = vector.broadcast %32 : vector<1x32xf32> to vector<4x32xf32>
    %34 = arith.addf %31, %33 : vector<4x32xf32>
    %c0_24 = arith.constant 0 : index
    %c96 = arith.constant 96 : index
    %35 = vector.load %arg4[%c0_24, %c96] : memref<4x256xf32, #tpu.memory_space<vmem>>, vector<4x32xf32>
    tpu.vector_store %arg4[%c0_24, %c96], %34 {strides = array<i32>} : memref<4x256xf32, #tpu.memory_space<vmem>>, vector<4x32xf32>,
    %c0_25 = arith.constant 0 : index
    %c4 = arith.constant 4 : index
    %36 = vector.load %arg1[%c0_25, %c4] : memref<4x8xf32, #tpu.memory_space<vmem>>, vector<4x1xf32>
    %c4_26 = arith.constant 4 : index
    %c0_27 = arith.constant 0 : index
    %37 = vector.load %arg2[%c4_26, %c0_27] : memref<8x32xf32, #tpu.memory_space<vmem>>, vector<1x32xf32>
    %38 = vector.broadcast %36 : vector<4x1xf32> to vector<4x32xf32>
    %39 = vector.broadcast %37 : vector<1x32xf32> to vector<4x32xf32>
    %40 = arith.mulf %38, %39 : vector<4x32xf32>
    %c4_28 = arith.constant 4 : index
    %c0_29 = arith.constant 0 : index
    %41 = vector.load %arg3[%c4_28, %c0_29] : memref<8x32xf32, #tpu.memory_space<vmem>>, vector<1x32xf32>
    %42 = vector.broadcast %41 : vector<1x32xf32> to vector<4x32xf32>
    %43 = arith.addf %40, %42 : vector<4x32xf32>
    %c0_30 = arith.constant 0 : index
    %c128 = arith.constant 128 : index
    %44 = vector.load %arg4[%c0_30, %c128] : memref<4x256xf32, #tpu.memory_space<vmem>>, vector<4x32xf32>
    tpu.vector_store %arg4[%c0_30, %c128], %43 {strides = array<i32>} : memref<4x256xf32, #tpu.memory_space<vmem>>, vector<4x32xf32>,
    %c0_31 = arith.constant 0 : index
    %c5 = arith.constant 5 : index
    %45 = vector.load %arg1[%c0_31, %c5] : memref<4x8xf32, #tpu.memory_space<vmem>>, vector<4x1xf32>
    %c5_32 = arith.constant 5 : index
    %c0_33 = arith.constant 0 : index
    %46 = vector.load %arg2[%c5_32, %c0_33] : memref<8x32xf32, #tpu.memory_space<vmem>>, vector<1x32xf32>
    %47 = vector.broadcast %45 : vector<4x1xf32> to vector<4x32xf32>
    %48 = vector.broadcast %46 : vector<1x32xf32> to vector<4x32xf32>
    %49 = arith.mulf %47, %48 : vector<4x32xf32>
    %c5_34 = arith.constant 5 : index
    %c0_35 = arith.constant 0 : index
    %50 = vector.load %arg3[%c5_34, %c0_35] : memref<8x32xf32, #tpu.memory_space<vmem>>, vector<1x32xf32>
    %51 = vector.broadcast %50 : vector<1x32xf32> to vector<4x32xf32>
    %52 = arith.addf %49, %51 : vector<4x32xf32>
    %c0_36 = arith.constant 0 : index
    %c160 = arith.constant 160 : index
    %53 = vector.load %arg4[%c0_36, %c160] : memref<4x256xf32, #tpu.memory_space<vmem>>, vector<4x32xf32>
    tpu.vector_store %arg4[%c0_36, %c160], %52 {strides = array<i32>} : memref<4x256xf32, #tpu.memory_space<vmem>>, vector<4x32xf32>,
    %c0_37 = arith.constant 0 : index
    %c6 = arith.constant 6 : index
    %54 = vector.load %arg1[%c0_37, %c6] : memref<4x8xf32, #tpu.memory_space<vmem>>, vector<4x1xf32>
    %c6_38 = arith.constant 6 : index
    %c0_39 = arith.constant 0 : index
    %55 = vector.load %arg2[%c6_38, %c0_39] : memref<8x32xf32, #tpu.memory_space<vmem>>, vector<1x32xf32>
    %56 = vector.broadcast %54 : vector<4x1xf32> to vector<4x32xf32>
    %57 = vector.broadcast %55 : vector<1x32xf32> to vector<4x32xf32>
    %58 = arith.mulf %56, %57 : vector<4x32xf32>
    %c6_40 = arith.constant 6 : index
    %c0_41 = arith.constant 0 : index
    %59 = vector.load %arg3[%c6_40, %c0_41] : memref<8x32xf32, #tpu.memory_space<vmem>>, vector<1x32xf32>
    %60 = vector.broadcast %59 : vector<1x32xf32> to vector<4x32xf32>
    %61 = arith.addf %58, %60 : vector<4x32xf32>
    %c0_42 = arith.constant 0 : index
    %c192 = arith.constant 192 : index
    %62 = vector.load %arg4[%c0_42, %c192] : memref<4x256xf32, #tpu.memory_space<vmem>>, vector<4x32xf32>
    tpu.vector_store %arg4[%c0_42, %c192], %61 {strides = array<i32>} : memref<4x256xf32, #tpu.memory_space<vmem>>, vector<4x32xf32>,
    %c0_43 = arith.constant 0 : index
    %c7 = arith.constant 7 : index
    %63 = vector.load %arg1[%c0_43, %c7] : memref<4x8xf32, #tpu.memory_space<vmem>>, vector<4x1xf32>
    %c7_44 = arith.constant 7 : index
    %c0_45 = arith.constant 0 : index
    %64 = vector.load %arg2[%c7_44, %c0_45] : memref<8x32xf32, #tpu.memory_space<vmem>>, vector<1x32xf32>
    %65 = vector.broadcast %63 : vector<4x1xf32> to vector<4x32xf32>
    %66 = vector.broadcast %64 : vector<1x32xf32> to vector<4x32xf32>
    %67 = arith.mulf %65, %66 : vector<4x32xf32>
    %c7_46 = arith.constant 7 : index
    %c0_47 = arith.constant 0 : index
    %68 = vector.load %arg3[%c7_46, %c0_47] : memref<8x32xf32, #tpu.memory_space<vmem>>, vector<1x32xf32>
    %69 = vector.broadcast %68 : vector<1x32xf32> to vector<4x32xf32>
    %70 = arith.addf %67, %69 : vector<4x32xf32>
    %c0_48 = arith.constant 0 : index
    %c224 = arith.constant 224 : index
    %71 = vector.load %arg4[%c0_48, %c224] : memref<4x256xf32, #tpu.memory_space<vmem>>, vector<4x32xf32>
    tpu.vector_store %arg4[%c0_48, %c224], %70 {strides = array<i32>} : memref<4x256xf32, #tpu.memory_space<vmem>>, vector<4x32xf32>,
    return
  }
  func.func @transform_0(%arg0: i32) -> (i32, i32) {
    %c0_i32 = arith.constant 0 : i32
    %c0_i32_0 = arith.constant 0 : i32
    return %arg0, %c0_i32 : i32, i32
  }
  func.func @transform_1(%arg0: i32) -> (i32, i32) {
    %c0_i32 = arith.constant 0 : i32
    %c0_i32_0 = arith.constant 0 : i32
    %c0_i32_1 = arith.constant 0 : i32
    return %c0_i32, %c0_i32_0 : i32, i32
  }
  func.func @transform_2(%arg0: i32) -> (i32, i32) {
    %c0_i32 = arith.constant 0 : i32
    %c0_i32_0 = arith.constant 0 : i32
    %c0_i32_1 = arith.constant 0 : i32
    return %c0_i32, %c0_i32_0 : i32, i32
  }
  func.func @transform_3(%arg0: i32) -> (i32, i32) {
    %c0_i32 = arith.constant 0 : i32
    %c0_i32_0 = arith.constant 0 : i32
    return %arg0, %c0_i32 : i32, i32
  }
}

</mosaic_0001>

<bundles_post_ra>
// kernel: tpu_custom_call.1
= control target key start
LH: loop header
LB: loop body
LE: loop exit
PB: predicated region body
PF: predicated region fallthrough
CT: control target
= control target key end

     0   :  { %8 = vsyncpa [#allocation3], 0  ;;  %s462_s0 = inlined_call_operand.hbm [shape: f32[4,8], index: 0, kind: input, shape index: {}]   ;;  %s463_s1 = inlined_call_operand.hbm [shape: f32[8,32], index: 1, kind: input, shape index: {}]   ;;  %s464_s2 = inlined_call_operand.hbm [shape: f32[8,32], index: 2, kind: input, shape index: {}]   ;;  %s465_s3 = inlined_call_operand.hbm [shape: f32[4,256], index: 3, kind: output, shape index: {}]  }
   0x1   :  { %9 = vsyncpa [#allocation6], 0 }
   0x2   :  { %10 = vsyncpa [#allocation4], 0  ;;  %s379_s12 = smov [#allocation5]   ;;  %s380_s14 = smov [#allocation2]  }
   0x3   :  { %s27_s13 = sshll.u32 %s379_s12, 4  ;;  %s17_s15 = sshll.u32 %s380_s14, 4  ;;  %s28_s13 = int_to_ptr.vmem [resolvable:$true] %s27_s13  ;;  %s18_s15 = int_to_ptr.vmem [resolvable:$true] %s17_s15 }
   0x4   :  { %s285_s18 = scalar_lea.hbm %s463_s1, 128 }
   0x5   :  { %p286_p0 = scmp.ne.s32.totalorder %s463_s1, %s285_s18  ;;  %p289_p1 = scmp.lt.u32.totalorder %s285_s18, %s463_s1 }
   0x7   :  { %p291_p2 = pnand %p289_p1, %p286_p0 }
   0x9   :  { %294 = shalt.err (!%p291_p2)
}
   0xa   :  { %s295_s23 = scalar_lea.vmem %s28_s13, 128  ;;  %p300_p4 = scmp.lt.s32.totalorder %s28_s13, %s28_s13 }
   0xb   :  { %p296_p3 = scmp.ne.s32.totalorder %s28_s13, %s295_s23  ;;  %p301_p5 = scmp.lt.s32.totalorder %s295_s23, %s295_s23 }
   0xd   :  { %p302_p6 = por %p301_p5, %p300_p4 }
   0xf   :  { %p303_p7 = pnand %p302_p6, %p296_p3 }
  0x11   :  { %306 = shalt.err (!%p303_p7)
}
  0x12   :  { %30 = dma.hbm_to_vmem [thread:$0]  %s463_s1, 128, %s28_s13, [#allocation6]  }
  0x13   :  { %s307_s28 = scalar_lea.hbm %s462_s0, 64 }
  0x14   :  { %p308_p8 = scmp.ne.s32.totalorder %s462_s0, %s307_s28  ;;  %p311_p9 = scmp.lt.u32.totalorder %s307_s28, %s462_s0 }
  0x16   :  { %p313_p10 = pnand %p311_p9, %p308_p8 }
  0x18   :  { %316 = shalt.err (!%p313_p10)
}
  0x19   :  { %s317_s6 = scalar_lea.vmem %s18_s15, 64  ;;  %p322_p12 = scmp.lt.s32.totalorder %s18_s15, %s18_s15 }
  0x1a   :  { %p318_p11 = scmp.ne.s32.totalorder %s18_s15, %s317_s6  ;;  %p323_p13 = scmp.lt.s32.totalorder %s317_s6, %s317_s6 }
  0x1c   :  { %p324_p0 = por %p323_p13, %p322_p12 }
  0x1e   :  { %p325_p1 = pnand %p324_p0, %p318_p11 }
  0x20   :  { %328 = shalt.err (!%p325_p1)
}
  0x21   :  { %20 = dma.hbm_to_vmem [thread:$0]  %s462_s0, 64, %s18_s15, [#allocation3]  }
  0x22   :  { %s381_s8 = smov [#allocation7]   ;;  %s329_s12 = scalar_lea.hbm %s464_s2, 128 }
  0x23   :  { %s37_s9 = sshll.u32 %s381_s8, 4  ;;  %p330_p2 = scmp.ne.s32.totalorder %s464_s2, %s329_s12  ;;  %s38_s9 = int_to_ptr.vmem [resolvable:$true] %s37_s9 }
  0x24   :  { %p333_p3 = scmp.lt.u32.totalorder %s329_s12, %s464_s2 }
  0x26   :  { %p335_p4 = pnand %p333_p3, %p330_p2 }
  0x28   :  { %338 = shalt.err (!%p335_p4)
}
  0x29   :  { %s339_s18 = scalar_lea.vmem %s38_s9, 128  ;;  %p344_p6 = scmp.lt.s32.totalorder %s38_s9, %s38_s9 }
  0x2a   :  { %p340_p5 = scmp.ne.s32.totalorder %s38_s9, %s339_s18  ;;  %p345_p7 = scmp.lt.s32.totalorder %s339_s18, %s339_s18 }
  0x2c   :  { %p346_p8 = por %p345_p7, %p344_p6 }
  0x2e   :  { %p347_p9 = pnand %p346_p8, %p340_p5 }
  0x30   :  { %350 = shalt.err (!%p347_p9)
}
  0x31   :  { %40 = dma.hbm_to_vmem [thread:$0]  %s464_s2, 128, %s38_s9, [#allocation6]  }
  0x32   :  { %373 = dma.done.wait [#allocation3], 64  }
  0x33   :  { %374 = vsyncadd [#allocation3], 4294967232 }
  0x34   :  { %375 = dma.done.wait [#allocation6], 256  }
  0x35   :  { %376 = vsyncadd [#allocation6], 4294967040  ;;  %v382_v0 = vmov 1   ;;  %v383_v1 = vmov 2   ;;  %v70_v2 = vld [vmem:[#allocation2] sm:$0xf] }
  0x36   :  { %277 = vset.pattern.permute.xlu0 %v382_v0  ;;  %279 = vset.pattern.permute.xlu1 %v383_v1  ;;  %v94_v3 = vld [vmem:[#allocation2] sm:$0xf]  ;;  %v384_v6 = vmov 5   ;;  %v385_v7 = vmov 6   ;;  %v386_v10 = vmov 3   ;;  %v387_v11 = vmov 7  }
  0x37   :  { %74 = vperm.xlu0 %277, %v70_v2   ;;  %98 = vperm.xlu1 %279, %v94_v3   ;;  %v161_v4 = vld [vmem:[#allocation2] sm:$0xf]  ;;  %v388_v13 = vmov 0   ;;  %v389_v15 = vmov 4   ;;  %v248_v16 = vld [vmem:[#allocation5 + $0x1] ss:$0 sm:$0xff] }
  0x38   :  { %v184_v5 = vld [vmem:[#allocation2] sm:$0xf]  ;;  %v250_v17 = vld [vmem:[#allocation5 + $0x2] ss:$0 sm:$0xff]  ;;  %v249_v18 = vld [vmem:[#allocation7 + $0x1] ss:$0 sm:$0xff] }
  0x39   :  { %v118_v8 = vld [vmem:[#allocation2] sm:$0xf]  ;;  %v251_v23 = vld [vmem:[#allocation7 + $0x2] ss:$0 sm:$0xff]  ;;  %v256_v25 = vld [vmem:[#allocation5 + $0x5] ss:$0 sm:$0xff] }
  0x3a   :  { %v207_v9 = vld [vmem:[#allocation2] sm:$0xf]  ;;  %v258_v26 = vld [vmem:[#allocation5 + $0x6] ss:$0 sm:$0xff]  ;;  %s390_s2 = smov 32   ;;  %s391_s19 = smov 64  }
  0x3b   :  { %278 = vset.pattern.permute.xlu0 %v384_v6  ;;  %280 = vset.pattern.permute.xlu1 %v385_v7  ;;  %v50_v12 = vld [vmem:[#allocation2] sm:$0xf]  ;;  %v257_v28 = vld [vmem:[#allocation7 + $0x5] ss:$0 sm:$0xff]  ;;  %v259_v33 = vld [vmem:[#allocation7 + $0x6] ss:$0 sm:$0xff] }
  0x3c   :  { %165 = vperm.xlu0 %278, %v161_v4   ;;  %188 = vperm.xlu1 %280, %v184_v5   ;;  %v142_v14 = vld [vmem:[#allocation2] sm:$0xf]  ;;  %v252_v35 = vld [vmem:[#allocation5 + $0x3] ss:$0 sm:$0xff]  ;;  %v260_v36 = vld [vmem:[#allocation5 + $0x7] ss:$0 sm:$0xff] }
  0x3d   :  { %v253_v38 = vld [vmem:[#allocation7 + $0x3] ss:$0 sm:$0xff]  ;;  %v261_v42 = vld [vmem:[#allocation7 + $0x7] ss:$0 sm:$0xff]  ;;  %v246_v45 = vld [vmem:[#allocation5] ss:$0 sm:$0xff] }
  0x3e   :  { %s392_s20 = smov 96   ;;  %v247_v47 = vld [vmem:[#allocation7] ss:$0 sm:$0xff]  ;;  %vm68_vm0 = vcmask 257024   ;;  %v254_v51 = vld [vmem:[#allocation5 + $0x4] ss:$0 sm:$0xff] }
  0x3f   :  { %v255_v52 = vld [vmem:[#allocation7 + $0x4] ss:$0 sm:$0xff]  ;;  %vm92_vm1 = vcmask 519424   ;;  %vm116_vm2 = vcmask 781824   ;;  %vm140_vm3 = vcmask 1044224   ;;  %s393_s21 = smov [#allocation8]  }
  0x40   :  { %281 = vset.pattern.permute.xlu1 %v386_v10  ;;  %282 = vset.pattern.permute.xlu0 %v387_v11  ;;  %s236_s22 = sshll.u32 %s393_s21, 4  ;;  %s237_s22 = int_to_ptr.vmem [resolvable:$true] %s236_s22 }
  0x41   :  { %122 = vperm.xlu1 %281, %v118_v8   ;;  %211 = vperm.xlu0 %282, %v207_v9   ;;  %s351_s23 = scalar_lea.vmem %s237_s22, 128  ;;  %p356_p11 = scmp.lt.s32.totalorder %s237_s22, %s237_s22 }
  0x42   :  { %p352_p10 = scmp.ne.s32.totalorder %s237_s22, %s351_s23  ;;  %p357_p12 = scmp.lt.s32.totalorder %s351_s23, %s351_s23 }
  0x44   :  { %p358_p13 = por %p357_p12, %p356_p11 }
  0x45   :  { %283 = vset.pattern.permute.xlu1 %v388_v13 }
  0x46   :  { %54 = vperm.xlu1 %283, %v50_v12   ;;  %p359_p0 = pnand %p358_p13, %p352_p10 }
  0x4a   :  { %284 = vset.pattern.permute.xlu1 %v389_v15 }
  0x4b   :  { %146 = vperm.xlu1 %284, %v142_v14  }
  0xb6   :  { %v75_v19 = vpop.permute.xlu0 %74  ;;  %v99_v20 = vpop.permute.xlu1 %98 }
  0xb7   :  { %v81_v21 = vmul.f32 %v248_v16, %v75_v19  ;;  %v105_v22 = vmul.f32 %v250_v17, %v99_v20 }
  0xb9   :  { %v87_v24 = vadd.f32 %v249_v18, %v81_v21  ;;  %v111_v27 = vadd.f32 %v251_v23, %v105_v22 }
  0xbb   :  { %89 = vrot.lane.b32.xlu0 %v87_v24, %s390_s2  ;;  %v166_v29 = vpop.permute.xlu0 %165  ;;  %v189_v30 = vpop.permute.xlu1 %188 }
  0xbc   :  { %v172_v31 = vmul.f32 %v256_v25, %v166_v29  ;;  %v195_v32 = vmul.f32 %v258_v26, %v189_v30 }
  0xbe   :  { %v178_v34 = vadd.f32 %v257_v28, %v172_v31  ;;  %v201_v37 = vadd.f32 %v259_v33, %v195_v32 }
  0xbf   :  { %113 = vrot.lane.b32.xlu0 %v111_v27, %s391_s19 }
  0xc0   :  { %180 = vrot.lane.b32.xlu1 %v178_v34, %s390_s2  ;;  %v123_v39 = vpop.permute.xlu1 %122  ;;  %v212_v40 = vpop.permute.xlu0 %211 }
  0xc1   :  { %v129_v41 = vmul.f32 %v252_v35, %v123_v39  ;;  %v218_v43 = vmul.f32 %v260_v36, %v212_v40 }
  0xc3   :  { %v135_v44 = vadd.f32 %v253_v38, %v129_v41  ;;  %v224_v46 = vadd.f32 %v261_v42, %v218_v43 }
  0xc4   :  { %203 = vrot.lane.b32.xlu1 %v201_v37, %s391_s19 }
  0xc5   :  { %137 = vrot.lane.b32.xlu0 %v135_v44, %s392_s20  ;;  %v55_v48 = vpop.permute.xlu1 %54 }
  0xc6   :  { %v61_v49 = vmul.f32 %v246_v45, %v55_v48 }
  0xc8   :  { %226 = vrot.lane.b32.xlu1 %v224_v46, %s392_s20  ;;  %v67_v50 = vadd.f32 %v247_v47, %v61_v49 }
  0xca   :  { %69 = vst.msk [vmem:[#allocation8] sm:$0xf] %vm68_vm0, %v67_v50  ;;  %v147_v53 = vpop.permute.xlu1 %146 }
  0xcb   :  { %v153_v54 = vmul.f32 %v254_v51, %v147_v53 }
  0xcd   :  { %v159_v55 = vadd.f32 %v255_v52, %v153_v54 }
  0xcf   :  { %160 = vst.msk [vmem:[#allocation8 + $0x4] sm:$0xf] %vm68_vm0, %v159_v55 }
 0x12d   :  { %v90_v56 = vpop.permute.xlu0 %89 }
 0x12e   :  { %93 = vst.msk [vmem:[#allocation8] sm:$0xf] %vm92_vm1, %v90_v56 }
 0x131   :  { %v114_v57 = vpop.permute.xlu0 %113 }
 0x132   :  { %117 = vst.msk [vmem:[#allocation8] sm:$0xf] %vm116_vm2, %v114_v57  ;;  %v181_v58 = vpop.permute.xlu1 %180 }
 0x133   :  { %183 = vst.msk [vmem:[#allocation8 + $0x4] sm:$0xf] %vm92_vm1, %v181_v58 }
 0x136   :  { %v204_v59 = vpop.permute.xlu1 %203 }
 0x137   :  { %206 = vst.msk [vmem:[#allocation8 + $0x4] sm:$0xf] %vm116_vm2, %v204_v59  ;;  %v138_v60 = vpop.permute.xlu0 %137 }
 0x138   :  { %141 = vst.msk [vmem:[#allocation8] sm:$0xf] %vm140_vm3, %v138_v60 }
 0x13a   :  { %v227_v61 = vpop.permute.xlu1 %226 }
 0x13b   :  { %229 = vst.msk [vmem:[#allocation8 + $0x4] sm:$0xf] %vm140_vm3, %v227_v61 }
 0x13c   :  { %362 = shalt.err (!%p359_p0)
}
 0x13d   :  { %s363_s26 = scalar_lea.hbm %s465_s3, 128 }
 0x13e   :  { %p364_p1 = scmp.ne.s32.totalorder %s465_s3, %s363_s26  ;;  %p367_p2 = scmp.lt.u32.totalorder %s363_s26, %s465_s3 }
 0x140   :  { %p369_p3 = pnand %p367_p2, %p364_p1 }
 0x142   :  { %372 = shalt.err (!%p369_p3)
}
 0x143   :  { %239 = dma.vmem_to_hbm [thread:$0]  %s237_s22, 128, %s465_s3, [#allocation4]  }
 0x144   :  { %377 = dma.done.wait [#allocation4], 128  }
 0x145   :  { %378 = vsyncadd [#allocation4], 4294967168 }
 0x146   :  { %243 = vsyncpa [#allocation3], 1 }
 0x147   :  { %244 = vsyncpa [#allocation6], 1 }
 0x148   :  { %245 = vsyncpa [#allocation4], 1 }

</bundles_post_ra>
